<compile_context>
chip_gen: v7x
topology: tpu7x:2x2x1
jax: 0.10.0
libtpu: 0.0.40
codegen_flags: <defaults>
</compile_context>

<pallas_src>
from functools import partial
from typing import Callable, Optional

import jax
import jax.numpy as jnp
from jax.experimental import pallas as pl
from jax.experimental.pallas import tpu as pltpu


_SMALL_N = 64 * 1024                      # below this, fused XLA elementwise wins
_LANE_CANDIDATES = (2048, 1024, 512, 256, 128)
_MIN_GRID_STEPS = 4                       # >= 2 blocks per TensorCore on v7x


def _hw_block_config():
    """Per-generation (block_bytes_per_operand, vmem_limit_bytes)."""
    vmem_phys = None
    try:
        vmem_phys = int(pltpu.get_tpu_info().vmem_capacity_bytes)
    except Exception:
        vmem_phys = None
    if vmem_phys is not None and vmem_phys > (64 << 20):
        # v5e / v6e: 128 MiB physical VMEM -> big blocks, generous scoped limit.
        return 8 << 20, 64 << 20
    # v7x-like (64 MiB per TC) or unknown: bounded blocks, conservative limit.
    return 4 << 20, 40 << 20


def _sublane_multiple(itemsize: int) -> int:
    # 4-byte -> 8, 2-byte -> 16, 1-byte -> 32 (packed rows per sublane tile).
    return max(8, 32 // max(1, itemsize))


def _threshold_kernel(x_ref, o_ref, *, threshold: float, bin_func, cmp_dtype):
    x = x_ref[...]
    if jnp.dtype(cmp_dtype) != jnp.dtype(x_ref.dtype):
        x = x.astype(cmp_dtype)           # only int/bool inputs pay the widen
    thr = jnp.asarray(threshold, dtype=cmp_dtype)
    # TODO(synk): tiling assumes bin_func is a pure elementwise comparison
    # (like torch.ge); a reducing / shape-changing bin_func is out of scope.
    o_ref[...] = bin_func(x, thr).astype(o_ref.dtype)


def _threshold_pallas_2d(x2d, threshold, bin_func, cmp_dtype, tile_rows,
                         vmem_limit_bytes, donate_input):
    rows, cols = x2d.shape
    grid = (pl.cdiv(rows, tile_rows),)
    kernel = partial(_threshold_kernel, threshold=threshold,
                     bin_func=bin_func, cmp_dtype=cmp_dtype)
    return pl.pallas_call(
        kernel,
        out_shape=jax.ShapeDtypeStruct((rows, cols), x2d.dtype),
        grid_spec=pltpu.PrefetchScalarGridSpec(
            num_scalar_prefetch=0,
            grid=grid,
            in_specs=[pl.BlockSpec((tile_rows, cols), lambda i: (i, 0))],
            out_specs=pl.BlockSpec((tile_rows, cols), lambda i: (i, 0)),
        ),
        input_output_aliases=({0: 0} if donate_input else {}),
        compiler_params=pltpu.CompilerParams(
            dimension_semantics=("parallel",),   # v7x: shard grid over 2 TCs
            vmem_limit_bytes=vmem_limit_bytes,
        ),
    )(x2d)


class Thresholding:
    """JAX/Pallas port of the PyTorch Thresholding module."""

    def __init__(self, threshold: Optional[float],
                 bin_func: Callable = jnp.greater_equal,
                 donate_input: bool = False):
        self.threshold = threshold
        self.bin_func = bin_func
        # Only set donate_input=True when the caller donates x (x dead after).
        self.donate_input = donate_input

    def __call__(self, x: jnp.ndarray) -> jnp.ndarray:
        if self.threshold is None:
            return x

        threshold = float(self.threshold)

        # Match PyTorch type promotion for tensor-vs-python-float comparison.
        if jnp.issubdtype(x.dtype, jnp.floating):
            cmp_dtype = x.dtype
        else:
            cmp_dtype = jnp.float32

        n = x.size
        # Largest lane-dense column width that divides N (no pad copy needed).
        cols = next((c for c in _LANE_CANDIDATES if n % c == 0), None)

        # Fast path: tiny tensors, or sizes that cannot be viewed lane-densely
        # without a padding copy (which would double HBM traffic).
        if n < _SMALL_N or cols is None:
            return self.bin_func(
                x.astype(cmp_dtype),
                jnp.asarray(threshold, dtype=cmp_dtype)).astype(x.dtype)

        rows = n // cols
        itemsize = jnp.dtype(x.dtype).itemsize
        sub = _sublane_multiple(itemsize)
        block_bytes, vmem_limit_bytes = _hw_block_config()

        # Block rows sized by bytes, rounded down to the packed sublane tile.
        tile_rows = max(sub, (block_bytes // (cols * itemsize)) // sub * sub)
        tile_rows = min(tile_rows, rows)

        # Keep the parallel grid axis at >= _MIN_GRID_STEPS steps when the
        # tensor is big enough, so both v7x TensorCores get multiple blocks.
        if rows // tile_rows < _MIN_GRID_STEPS and rows >= _MIN_GRID_STEPS * sub:
            tile_rows = max(sub, (rows // _MIN_GRID_STEPS) // sub * sub)

        # Row-major reshape of a contiguous array: free layout plumbing.
        x2d = x.reshape(rows, cols)
        out2d = _threshold_pallas_2d(x2d, threshold, self.bin_func, cmp_dtype,
                                     tile_rows, vmem_limit_bytes,
                                     self.donate_input)
        return out2d.reshape(x.shape)


if __name__ == "__main__":
    key = jax.random.PRNGKey(0)
    k1, k2, k3 = jax.random.split(key, 3)

    mod = Thresholding(threshold=0.5)

    # Small label-like tensor (NCHW sigmoid outputs) -> plain-JAX fast path.
    x_small = jax.random.uniform(k1, (2, 4, 16, 16), dtype=jnp.float32)
    y_small = jax.block_until_ready(mod(x_small))
    ref_small = (x_small >= 0.5).astype(x_small.dtype)
    assert y_small.shape == x_small.shape and y_small.dtype == x_small.dtype
    assert bool(jnp.all(y_small == ref_small))

    # Medium f32 tensor -> Pallas path (cols=2048, rows=64, grid split for 2 TCs).
    x_big = jax.random.uniform(k2, (2, 4, 128, 128), dtype=jnp.float32)
    y_big = jax.block_until_ready(mod(x_big))
    ref_big = (x_big >= 0.5).astype(x_big.dtype)
    assert y_big.shape == x_big.shape and y_big.dtype == x_big.dtype
    assert bool(jnp.all(y_big == ref_big))

    # bf16 tensor -> Pallas path with packed-sublane (16-row) tile rounding.
    x_bf16 = jax.random.uniform(k3, (2, 4, 128, 128), dtype=jnp.float32
                                ).astype(jnp.bfloat16)
    y_bf16 = jax.block_until_ready(mod(x_bf16))
    ref_bf16 = (x_bf16 >= jnp.asarray(0.5, jnp.bfloat16)).astype(x_bf16.dtype)
    assert y_bf16.shape == x_bf16.shape and y_bf16.dtype == x_bf16.dtype
    assert bool(jnp.all(y_bf16 == ref_bf16))

    # Integer labels compare against the float threshold (PyTorch promotion).
    x_int = jnp.arange(-4, 4, dtype=jnp.int32).reshape(2, 4)
    y_int = jax.block_until_ready(mod(x_int))
    ref_int = (x_int.astype(jnp.float32) >= 0.5).astype(x_int.dtype)
    assert y_int.dtype == x_int.dtype and bool(jnp.all(y_int == ref_int))

    # threshold=None -> identity (no kernel launched).
    mod_none = Thresholding(threshold=None)
    y_none = jax.block_until_ready(mod_none(x_small))
    assert bool(jnp.all(y_none == x_small))

    print("KERNEL_OK")
</pallas_src>

<mosaic_0001>
module attributes {stable_mosaic.version = 11 : i64} {
  func.func @_threshold_kernel(%arg0: i32, %arg1: memref<16x2048xf32, #tpu.memory_space<vmem>>, %arg2: memref<16x2048xf32, #tpu.memory_space<vmem>>) attributes {dimension_semantics = [#tpu.dimension_semantics<parallel>], iteration_bounds = array<i64: 4>, scalar_prefetch = 0 : i64, scratch_operands = 0 : i64, tpu.core_type = #tpu.core_type<tc>, window_params = [{transform_indices = @transform_0, window_bounds = array<i64: 16, 2048>}, {transform_indices = @transform_1, window_bounds = array<i64: 16, 2048>}]} {
    %c0 = arith.constant 0 : index
    %c0_0 = arith.constant 0 : index
    %0 = vector.load %arg1[%c0, %c0_0] : memref<16x2048xf32, #tpu.memory_space<vmem>>, vector<16x2048xf32>
    %cst = arith.constant 5.000000e-01 : f32
    %1 = vector.broadcast %cst : f32 to vector<16x2048xf32>
    %2 = arith.cmpf oge, %0, %1 : vector<16x2048xf32>
    %3 = arith.extui %2 : vector<16x2048xi1> to vector<16x2048xi32>
    %4 = arith.sitofp %3 : vector<16x2048xi32> to vector<16x2048xf32>
    %c0_1 = arith.constant 0 : index
    %c0_2 = arith.constant 0 : index
    %5 = vector.load %arg2[%c0_1, %c0_2] : memref<16x2048xf32, #tpu.memory_space<vmem>>, vector<16x2048xf32>
    tpu.vector_store %arg2[%c0_1, %c0_2], %4 {strides = array<i32>} : memref<16x2048xf32, #tpu.memory_space<vmem>>, vector<16x2048xf32>,
    return
  }
  func.func @transform_0(%arg0: i32) -> (i32, i32) {
    %c0_i32 = arith.constant 0 : i32
    %c0_i32_0 = arith.constant 0 : i32
    return %arg0, %c0_i32 : i32, i32
  }
  func.func @transform_1(%arg0: i32) -> (i32, i32) {
    %c0_i32 = arith.constant 0 : i32
    %c0_i32_0 = arith.constant 0 : i32
    return %arg0, %c0_i32 : i32, i32
  }
}

</mosaic_0001>

<bundles_post_ra>
// kernel: tpu_custom_call.1
= control target key start
LH: loop header
LB: loop body
LE: loop exit
PB: predicated region body
PF: predicated region fallthrough
CT: control target
= control target key end

     0   :  { %6 = vsyncpa [#allocation3], 0  ;;  %s869_s0 = inlined_call_operand.hbm [shape: f32[64,2048], index: 0, kind: input, shape index: {}]   ;;  %s870_s1 = inlined_call_operand.hbm [shape: f32[64,2048], index: 1, kind: output, shape index: {}]  }
   0x1   :  { %8 = vsyncpa [#allocation3 + $0x1], 0 }
   0x2   :  { %9 = vsyncpa [#allocation4], 0 }
   0x3   :  { %11 = vsyncpa [#allocation4 + $0x1], 0  ;;  %s604_s6 = smov 0   ;;  %s606_s7 = smov 0  }
   0x4   :  { %s608_s8 = smov 0   ;;  %s610_s9 = smov 0  }
   0x5 LB: > { %s625_s10 = sadd.s32 4294967295, %s585_s9   ;;  %s386_s11 = sadd.s32 4294967294, %s585_s9   ;;  %s585_s9 = sphi %s610_s9, %s882_s9   ;;  %s581_s8 = sphi %s608_s8, %s881_s8   ;;  %s577_s7 = sphi %s606_s7, %s880_s7   ;;  %s573_s6 = sphi %s604_s6, %s879_s6  }
   0x6   : > { %s629_s12 = sadd.s32 1, %s585_s9   ;;  %s24_s13 = sadd.s32 1, %s581_s8 }
   0x7   : > { %s21_s14 = ssub.s32 %s585_s9, %s629_s12  ;;  %p31_p0 = scmp.ne.s32.totalorder %s581_s8, %s577_s7 }
   0x8   : > { %p22_p1 = scmp.eq.s32.totalorder %s21_s14, 0  ;;  %p32_p2 = scmp.eq.s32.totalorder %s585_s9, 0 }
   0x9   : > { %p37_p3 = scmp.ne.s32.totalorder %s577_s7, %s573_s6  ;;  %p38_p4 = scmp.eq.s32.totalorder %s625_s10, 0 }
   0xa   : > { %s641_s15 = scalar_select %p22_p1, %s581_s8, %s24_s13  }
   0xb   : > { %p643_p5 = por %p32_p2, %p31_p0  ;;  %p647_p6 = por %p38_p4, %p37_p3 }
   0xc   : > { %p61_p7 = scmp.eq.s32.totalorder %s625_s10, 3  ;;  %p67_p8 = scmp.eq.s32.totalorder %s386_s11, 3 }
   0xd   : > { %p450_p9 = scmp.lt.s32.totalorder %s585_s9, 4  ;;  %s87_s20 = sand.u32 1, %s581_s8  }
   0xe   : > { %p653_p10 = por %p61_p7, %p31_p0  ;;  %p657_p11 = por %p67_p8, %p37_p3 }
   0xf   : > { %s435_s21 = sshll.u32 %s585_s9, 12  ;;  %s389_s22 = sshll.u32 %s87_s20, 8 }
  0x10   : > { %s874_s18 = scalar_select %p653_p10, 1, 0 }
  0x11   : > { %s875_s19 = scalar_select %p657_p11, 1, 0 }
  0x12   : > { %s666_s25 = scalar_lea.hbm %s869_s0, %s435_s21  ;;  %s91_s26 = scalar_lea.vmem [#allocation2], %s389_s22 }
  0x13   : > { %s99_s27 = sshll.u32 %s91_s26, 4  ;;  %p670_p12 = pnand %p450_p9, %p643_p5  ;;  %s674_s27 = int_to_ptr.vmem [resolvable:$true] %s99_s27 }
  0x14   : > { %s676_s29 = scalar_lea.sflag [#allocation3], %s87_s20  ;;  %s489_s30 = scalar_lea.hbm %s666_s25, 4096 }
  0x15   : > { %p490_p13 = scmp.ne.s32.totalorder %s666_s25, %s489_s30  ;;  %p491_p0 = pneg %p670_p12 }
  0x16   : > { %s494_s4 = scalar_lea.hbm %s869_s0, 16384  ;;  %p495_p3 = scmp.lt.u32.totalorder %s666_s25, %s869_s0 }
  0x17   : > { %p492_p1 = pnand %p491_p0, %p490_p13  ;;  %p496_p4 = scmp.lt.u32.totalorder %s494_s4, %s489_s30 }
  0x18   : > { %p498_p7 = scmp.lt.u32.totalorder %s489_s30, %s666_s25 }
  0x19   : > { %p493_p2 = pneg %p492_p1  ;;  %p497_p5 = por %p496_p4, %p495_p3 }
  0x1b   : > { %p499_p8 = por %p498_p7, %p497_p5 }
  0x1d   : > { %p500_p9 = pnand %p499_p8, %p493_p2 }
  0x1f   : > { %503 = shalt.err (!%p500_p9)
}
  0x20   : > { %s504_s13 = scalar_lea.vmem %s674_s27, 4096  ;;  %s587_s14 = smov [#allocation2]  }
  0x21   : > { %p505_p13 = scmp.ne.s32.totalorder %s674_s27, %s504_s13  ;;  %s509_s16 = sshll.u32 %s587_s14, 4  ;;  %s510_s16 = int_to_ptr.vmem [resolvable:$false] %s509_s16 }
  0x22   : > { %s511_s20 = scalar_lea.vmem %s510_s16, 8192  ;;  %p512_p10 = scmp.lt.s32.totalorder %s674_s27, %s510_s16 }
  0x23   : > { %p507_p1 = pnand %p505_p13, %p491_p0  ;;  %p513_p3 = scmp.lt.s32.totalorder %s511_s20, %s504_s13 }
  0x25   : > { %p508_p11 = pneg %p507_p1  ;;  %p514_p4 = por %p513_p3, %p512_p10 }
  0x27   : > { %p515_p5 = pnand %p514_p4, %p508_p11 }
  0x29   : > { %518 = shalt.err (!%p515_p5)
}
  0x2a   : > { %s588_s21 = smov 2048   ;;  %s589_s22 = smov 128  }
  0x2b   : > { %445 = dma.hbm_to_vmem [thread:$0]  (!%p670_p12), %s666_s25, 4096, %s674_s27, %s676_s29, %s588_s21, %s588_s21, %s589_s22  }
  0x2c   : > { %p393_p0 = scmp.ge.s32.totalorder %s585_s9, 1  ;;  %p107_p2 = scmp.lt.s32.totalorder %s585_s9, 5 }
  0x2e   : > { %p108_p7 = pnand %p393_p0, %p107_p2 }
  0x2f   : > { %s707_s23 = sand.u32 (!%p108_p7), 1, %s577_s7  }
  0x30   : > { %111 = sbr.rel (%p108_p7) target bundleno = 102 (0x66), region = 24  ;;  %s394_s24 = sshll.u32 (!%p108_p7), %s707_s23, 8 }
  0x31   : > { %s114_s26 = scalar_lea.sflag (!%p108_p7), [#allocation3], %s707_s23  ;;  %s711_s30 = scalar_lea.vmem (!%p108_p7), [#allocation2], %s394_s24 }
  0x37   : > { %564 = dma.done.wait (%p647_p6), %s114_s26, 4096  }
  0x38   : > { %566 = vsyncadd (%p647_p6), %s114_s26, 4294963200  ;;  %v138_v0 = vld [vmem:[%s711_s30] sm:$0xff]  ;;  %v139_v1 = vld [vmem:[%s711_s30 + $0x8] sm:$0xff]  ;;  %s437_s25 = sshll.u32 %s625_s10, 12  ;;  %s721_s27 = scalar_lea.vmem [#allocation5], %s394_s24  ;;  %v590_v6 = vmov 0.0  }
  0x39   : > { %v140_v2 = vld [vmem:[%s711_s30 + $0x10] sm:$0xff]  ;;  %s313_s17 = sshll.u32 %s721_s27, 4  ;;  %vm170_vm0 = vcmp.ge.f32.partialorder %v138_v0, 0.5  ;;  %vm171_vm1 = vcmp.ge.f32.partialorder %v139_v1, 0.5  ;;  %v141_v3 = vld [vmem:[%s711_s30 + $0x18] sm:$0xff]  ;;  %v142_v4 = vld [vmem:[%s711_s30 + $0x20] sm:$0xff]  ;;  %s813_s2 = scalar_lea.hbm %s870_s1, %s437_s25  ;;  %s817_s17 = int_to_ptr.vmem [resolvable:$true] %s313_s17 }
  0x3a   : > { %vm172_vm2 = vcmp.ge.f32.partialorder %v140_v2, 0.5  ;;  %v143_v5 = vld [vmem:[%s711_s30 + $0x28] sm:$0xff]  ;;  %v396_v7 = vsel %vm170_vm0, 1.0, %v590_v6  ;;  %v397_v8 = vsel %vm171_vm1, 1.0, %v590_v6  ;;  %vm173_vm3 = vcmp.ge.f32.partialorder %v141_v3, 0.5  ;;  %v144_v10 = vld [vmem:[%s711_s30 + $0x30] sm:$0xff] }
  0x3b   : > { %v398_v9 = vsel %vm172_vm2, 1.0, %v590_v6  ;;  %v145_v11 = vld [vmem:[%s711_s30 + $0x38] sm:$0xff]  ;;  %266 = vst [vmem:[%s721_s27] sm:$0xff] %v396_v7  ;;  %267 = vst [vmem:[%s721_s27 + $0x8] sm:$0xff] %v397_v8  ;;  %v399_v12 = vsel %vm173_vm3, 1.0, %v590_v6  ;;  %vm174_vm4 = vcmp.ge.f32.partialorder %v142_v4, 0.5  ;;  %vm175_vm5 = vcmp.ge.f32.partialorder %v143_v5, 0.5 }
  0x3c   : > { %268 = vst [vmem:[%s721_s27 + $0x10] sm:$0xff] %v398_v9  ;;  %vm176_vm6 = vcmp.ge.f32.partialorder %v144_v10, 0.5  ;;  %v146_v13 = vld [vmem:[%s711_s30 + $0x40] sm:$0xff]  ;;  %v147_v14 = vld [vmem:[%s711_s30 + $0x48] sm:$0xff]  ;;  %269 = vst [vmem:[%s721_s27 + $0x18] sm:$0xff] %v399_v12  ;;  %v400_v15 = vsel %vm174_vm4, 1.0, %v590_v6 }
  0x3d   : > { %v401_v16 = vsel %vm175_vm5, 1.0, %v590_v6  ;;  %v402_v17 = vsel %vm176_vm6, 1.0, %v590_v6  ;;  %vm177_vm7 = vcmp.ge.f32.partialorder %v145_v11, 0.5  ;;  %v148_v18 = vld [vmem:[%s711_s30 + $0x50] sm:$0xff]  ;;  %v149_v19 = vld [vmem:[%s711_s30 + $0x58] sm:$0xff]  ;;  %270 = vst [vmem:[%s721_s27 + $0x20] sm:$0xff] %v400_v15 }
  0x3e   : > { %271 = vst [vmem:[%s721_s27 + $0x28] sm:$0xff] %v401_v16  ;;  %272 = vst [vmem:[%s721_s27 + $0x30] sm:$0xff] %v402_v17  ;;  %v403_v20 = vsel %vm177_vm7, 1.0, %v590_v6  ;;  %vm178_vm8 = vcmp.ge.f32.partialorder %v146_v13, 0.5  ;;  %vm179_vm9 = vcmp.ge.f32.partialorder %v147_v14, 0.5  ;;  %vm180_vm10 = vcmp.ge.f32.partialorder %v148_v18, 0.5 }
  0x3f   : > { %v150_v21 = vld [vmem:[%s711_s30 + $0x60] sm:$0xff]  ;;  %v151_v22 = vld [vmem:[%s711_s30 + $0x68] sm:$0xff]  ;;  %273 = vst [vmem:[%s721_s27 + $0x38] sm:$0xff] %v403_v20  ;;  %v404_v23 = vsel %vm178_vm8, 1.0, %v590_v6  ;;  %v405_v24 = vsel %vm179_vm9, 1.0, %v590_v6  ;;  %v406_v25 = vsel %vm180_vm10, 1.0, %v590_v6 }
  0x40   : > { %vm181_vm11 = vcmp.ge.f32.partialorder %v149_v19, 0.5  ;;  %v152_v26 = vld [vmem:[%s711_s30 + $0x70] sm:$0xff]  ;;  %v153_v27 = vld [vmem:[%s711_s30 + $0x78] sm:$0xff]  ;;  %274 = vst [vmem:[%s721_s27 + $0x40] sm:$0xff] %v404_v23  ;;  %275 = vst [vmem:[%s721_s27 + $0x48] sm:$0xff] %v405_v24  ;;  %vm182_vm12 = vcmp.ge.f32.partialorder %v150_v21, 0.5 }
  0x41   : > { %276 = vst [vmem:[%s721_s27 + $0x50] sm:$0xff] %v406_v25  ;;  %v407_v28 = vsel %vm181_vm11, 1.0, %v590_v6  ;;  %vm183_vm13 = vcmp.ge.f32.partialorder %v151_v22, 0.5  ;;  %vm184_vm14 = vcmp.ge.f32.partialorder %v152_v26, 0.5  ;;  %v154_v29 = vld [vmem:[%s711_s30 + $0x80] sm:$0xff]  ;;  %v155_v30 = vld [vmem:[%s711_s30 + $0x88] sm:$0xff] }
  0x42   : > { %277 = vst [vmem:[%s721_s27 + $0x58] sm:$0xff] %v407_v28  ;;  %v408_v31 = vsel %vm182_vm12, 1.0, %v590_v6  ;;  %v409_v32 = vsel %vm183_vm13, 1.0, %v590_v6  ;;  %v410_v33 = vsel %vm184_vm14, 1.0, %v590_v6  ;;  %vm185_vm15 = vcmp.ge.f32.partialorder %v153_v27, 0.5  ;;  %v156_v34 = vld [vmem:[%s711_s30 + $0x90] sm:$0xff] }
  0x43   : > { %v157_v35 = vld [vmem:[%s711_s30 + $0x98] sm:$0xff]  ;;  %278 = vst [vmem:[%s721_s27 + $0x60] sm:$0xff] %v408_v31  ;;  %279 = vst [vmem:[%s721_s27 + $0x68] sm:$0xff] %v409_v32  ;;  %v411_v36 = vsel %vm185_vm15, 1.0, %v590_v6  ;;  %vm186_vm0 = vcmp.ge.f32.partialorder %v154_v29, 0.5  ;;  %vm187_vm1 = vcmp.ge.f32.partialorder %v155_v30, 0.5 }
  0x44   : > { %280 = vst [vmem:[%s721_s27 + $0x70] sm:$0xff] %v410_v33  ;;  %vm188_vm2 = vcmp.ge.f32.partialorder %v156_v34, 0.5  ;;  %v158_v37 = vld [vmem:[%s711_s30 + $0xa0] sm:$0xff]  ;;  %v159_v38 = vld [vmem:[%s711_s30 + $0xa8] sm:$0xff]  ;;  %281 = vst [vmem:[%s721_s27 + $0x78] sm:$0xff] %v411_v36  ;;  %v412_v39 = vsel %vm186_vm0, 1.0, %v590_v6 }
  0x45   : > { %v413_v40 = vsel %vm187_vm1, 1.0, %v590_v6  ;;  %v414_v41 = vsel %vm188_vm2, 1.0, %v590_v6  ;;  %vm189_vm3 = vcmp.ge.f32.partialorder %v157_v35, 0.5  ;;  %v160_v42 = vld [vmem:[%s711_s30 + $0xb0] sm:$0xff]  ;;  %v161_v43 = vld [vmem:[%s711_s30 + $0xb8] sm:$0xff]  ;;  %282 = vst [vmem:[%s721_s27 + $0x80] sm:$0xff] %v412_v39 }
  0x46   : > { %283 = vst [vmem:[%s721_s27 + $0x88] sm:$0xff] %v413_v40  ;;  %284 = vst [vmem:[%s721_s27 + $0x90] sm:$0xff] %v414_v41  ;;  %v415_v44 = vsel %vm189_vm3, 1.0, %v590_v6  ;;  %vm190_vm4 = vcmp.ge.f32.partialorder %v158_v37, 0.5  ;;  %vm191_vm5 = vcmp.ge.f32.partialorder %v159_v38, 0.5  ;;  %vm192_vm6 = vcmp.ge.f32.partialorder %v160_v42, 0.5 }
  0x47   : > { %v162_v45 = vld [vmem:[%s711_s30 + $0xc0] sm:$0xff]  ;;  %v163_v46 = vld [vmem:[%s711_s30 + $0xc8] sm:$0xff]  ;;  %285 = vst [vmem:[%s721_s27 + $0x98] sm:$0xff] %v415_v44  ;;  %v416_v47 = vsel %vm190_vm4, 1.0, %v590_v6  ;;  %v417_v48 = vsel %vm191_vm5, 1.0, %v590_v6  ;;  %v418_v49 = vsel %vm192_vm6, 1.0, %v590_v6 }
  0x48   : > { %vm193_vm7 = vcmp.ge.f32.partialorder %v161_v43, 0.5  ;;  %v164_v50 = vld [vmem:[%s711_s30 + $0xd0] sm:$0xff]  ;;  %v165_v51 = vld [vmem:[%s711_s30 + $0xd8] sm:$0xff]  ;;  %286 = vst [vmem:[%s721_s27 + $0xa0] sm:$0xff] %v416_v47  ;;  %287 = vst [vmem:[%s721_s27 + $0xa8] sm:$0xff] %v417_v48  ;;  %vm194_vm8 = vcmp.ge.f32.partialorder %v162_v45, 0.5 }
  0x49   : > { %288 = vst [vmem:[%s721_s27 + $0xb0] sm:$0xff] %v418_v49  ;;  %v419_v52 = vsel %vm193_vm7, 1.0, %v590_v6  ;;  %vm195_vm9 = vcmp.ge.f32.partialorder %v163_v46, 0.5  ;;  %vm196_vm10 = vcmp.ge.f32.partialorder %v164_v50, 0.5  ;;  %v166_v53 = vld [vmem:[%s711_s30 + $0xe0] sm:$0xff]  ;;  %v167_v54 = vld [vmem:[%s711_s30 + $0xe8] sm:$0xff] }
  0x4a   : > { %289 = vst [vmem:[%s721_s27 + $0xb8] sm:$0xff] %v419_v52  ;;  %v420_v55 = vsel %vm194_vm8, 1.0, %v590_v6  ;;  %v421_v56 = vsel %vm195_vm9, 1.0, %v590_v6  ;;  %v422_v57 = vsel %vm196_vm10, 1.0, %v590_v6  ;;  %vm197_vm11 = vcmp.ge.f32.partialorder %v165_v51, 0.5  ;;  %v168_v58 = vld [vmem:[%s711_s30 + $0xf0] sm:$0xff] }
  0x4b   : > { %v169_v59 = vld [vmem:[%s711_s30 + $0xf8] sm:$0xff]  ;;  %290 = vst [vmem:[%s721_s27 + $0xc0] sm:$0xff] %v420_v55  ;;  %291 = vst [vmem:[%s721_s27 + $0xc8] sm:$0xff] %v421_v56  ;;  %v423_v60 = vsel %vm197_vm11, 1.0, %v590_v6  ;;  %vm198_vm12 = vcmp.ge.f32.partialorder %v166_v53, 0.5  ;;  %vm199_vm13 = vcmp.ge.f32.partialorder %v167_v54, 0.5 }
  0x4c   : > { %292 = vst [vmem:[%s721_s27 + $0xd0] sm:$0xff] %v422_v57  ;;  %vm200_vm14 = vcmp.ge.f32.partialorder %v168_v58, 0.5  ;;  %293 = vst [vmem:[%s721_s27 + $0xd8] sm:$0xff] %v423_v60  ;;  %v424_v61 = vsel %vm198_vm12, 1.0, %v590_v6  ;;  %v425_v62 = vsel %vm199_vm13, 1.0, %v590_v6  ;;  %vm201_vm15 = vcmp.ge.f32.partialorder %v169_v59, 0.5 }
  0x4d   : > { %v426_v63 = vsel %vm200_vm14, 1.0, %v590_v6  ;;  %294 = vst [vmem:[%s721_s27 + $0xe0] sm:$0xff] %v424_v61  ;;  %295 = vst [vmem:[%s721_s27 + $0xe8] sm:$0xff] %v425_v62  ;;  %v427_v0 = vsel %vm201_vm15, 1.0, %v590_v6  ;;  %s299_s10 = scalar_lea.sflag [#allocation4], %s707_s23  ;;  %s519_s3 = scalar_lea.vmem %s817_s17, 4096 }
  0x4e   : > { %296 = vst [vmem:[%s721_s27 + $0xf0] sm:$0xff] %v426_v63  ;;  %297 = vst [vmem:[%s721_s27 + $0xf8] sm:$0xff] %v427_v0  ;;  %p520_p6 = scmp.ne.s32.totalorder %s817_s17, %s519_s3  ;;  %p877_p10 = scmp.ne.s32.totalorder %s874_s18, 0 }
  0x4f   : > { %s591_s4 = smov [#allocation5]  }
  0x50   : > { %p521_p11 = pnand %p520_p6, %p877_p10  ;;  %s523_s5 = sshll.u32 %s591_s4, 4  ;;  %s524_s5 = int_to_ptr.vmem [resolvable:$false] %s523_s5 }
  0x51   : > { %s525_s11 = scalar_lea.vmem %s524_s5, 8192  ;;  %p526_p8 = scmp.lt.s32.totalorder %s817_s17, %s524_s5 }
  0x52   : > { %p522_p12 = pneg %p521_p11  ;;  %p527_p9 = scmp.lt.s32.totalorder %s525_s11, %s519_s3 }
  0x54   : > { %p528_p13 = por %p527_p9, %p526_p8 }
  0x56   : > { %p529_p1 = pnand %p528_p13, %p522_p12 }
  0x58   : > { %532 = shalt.err (!%p529_p1)
}
  0x59   : > { %s533_s13 = scalar_lea.hbm %s813_s2, 4096  ;;  %s537_s20 = scalar_lea.hbm %s870_s1, 16384 }
  0x5a   : > { %p534_p3 = scmp.ne.s32.totalorder %s813_s2, %s533_s13  ;;  %p538_p0 = scmp.lt.u32.totalorder %s813_s2, %s870_s1 }
  0x5b   : > { %p539_p2 = scmp.lt.u32.totalorder %s537_s20, %s533_s13  ;;  %p541_p6 = scmp.lt.u32.totalorder %s533_s13, %s813_s2 }
  0x5c   : > { %p535_p4 = pnand %p534_p3, %p877_p10 }
  0x5d   : > { %p540_p7 = por %p539_p2, %p538_p0 }
  0x5e   : > { %p536_p5 = pneg %p535_p4 }
  0x5f   : > { %p542_p11 = por %p541_p6, %p540_p7 }
  0x61   : > { %p543_p12 = pnand %p542_p11, %p536_p5 }
  0x63   : > { %546 = shalt.err (!%p543_p12)
}
  0x64   : > { %s592_s24 = smov 2048   ;;  %s593_s26 = smov 128  }
  0x65   : > { %440 = dma.vmem_to_hbm [thread:$0]  (%p877_p10), %s817_s17, 4096, %s813_s2, %s299_s10, %s592_s24, %s592_s24, %s593_s26  }
  0x66 PF: > { %p451_p8 = scmp.ge.s32.totalorder %s585_s9, 2  ;;  %s328_s30 = sand.u32 1, %s573_s6  }
  0x67   : > { %p878_p9 = scmp.ne.s32.totalorder %s875_s19, 0  ;;  %s329_s25 = scalar_lea.sflag [#allocation4], %s328_s30 }
  0x69   : > { %p447_p13 = pnand %p451_p8, %p878_p9 }
  0x6b   : > { %568 = dma.done.wait (!%p447_p13), %s329_s25, 4096  }
  0x6c   : > { %570 = vsyncadd (!%p447_p13), %s329_s25, 4294963200  ;;  %p14_p1 = scmp.ge.s32.totalorder %s629_s12, 6   ;;  %s879_s6 = smov %s577_s7 }
  0x6d   : > { %s880_s7 = smov %s581_s8  ;;  %s881_s8 = smov %s641_s15 }
  0x6e   : > { %s882_s9 = smov %s629_s12  ;;  %16 = sbr.rel (!%p14_p1) target bundleno = 5 (0x5), region = 69 }
  0x75   :  { %334 = vsyncpa [#allocation3], 1 }
  0x76   :  { %336 = vsyncpa [#allocation3 + $0x1], 1 }
  0x77   :  { %337 = vsyncpa [#allocation4], 1 }
  0x78   :  { %339 = vsyncpa [#allocation4 + $0x1], 1 }

</bundles_post_ra>
